<compile_context>
chip_gen: v6e
topology: v6e:2x2x1
jax: 0.10.0
libtpu: 0.0.40
codegen_flags: <defaults>
</compile_context>

<pallas_src>
import math
import functools
import numpy as np
import jax
import jax.numpy as jnp
from jax.experimental import pallas as pl
from jax.experimental.pallas import tpu as pltpu

IGNORE_ID = -1

# bf16 MXU inputs (v6e/v7x native peak); f32 accumulation everywhere.
MXU_DTYPE = jnp.bfloat16
WEIGHT_DTYPE = jnp.bfloat16

_TM_PREF = 256      # row tile preference (divisible by 8)
_TN_PREF = 512      # col tile preference (divisible by 128)
_TQ_PREF = 256      # attention query tile preference


def _chip_vmem_bytes():
    try:
        return int(pltpu.get_tpu_info().vmem_capacity_bytes)
    except Exception:
        return 64 * 1024 * 1024


_VMEM_CAP = _chip_vmem_bytes()
# generation-aware FFN settings: smaller tile + budget on 64-MiB-VMEM parts
_FFN_TM = 128 if _VMEM_CAP <= 64 * 1024 * 1024 else 256
_VMEM_LIMIT = int(min(_VMEM_CAP * 3 // 4, 96 * 1024 * 1024))


def _row_tile(m, pref=_TM_PREF):
    return m if m <= pref else pref


def _col_tile(n, pref=_TN_PREF):
    return n if n <= pref else pref


def _seq_tile(l, pref=_TQ_PREF):
    return l if l <= pref else pref


def _mm_layout(M, N, tm, tn):
    """Grid + index maps with the larger axis outermost (megacore-friendly)."""
    gm, gn = pl.cdiv(M, tm), pl.cdiv(N, tn)
    if gn > gm:
        grid = (gn, gm)
        x_map = lambda j, i: (i, 0)
        w_map = lambda j, i: (0, j)
        o_map = lambda j, i: (i, j)
    else:
        grid = (gm, gn)
        x_map = lambda i, j: (i, 0)
        w_map = lambda i, j: (0, j)
        o_map = lambda i, j: (i, j)
    return grid, x_map, w_map, o_map


# ----------------------------------------------------------------------------
# Pallas kernels
# ----------------------------------------------------------------------------

def _linear_kernel(x_ref, w_ref, b_ref, o_ref):
    x = x_ref[...].astype(MXU_DTYPE)
    w = w_ref[...].astype(MXU_DTYPE)
    o_ref[...] = (jnp.dot(x, w, preferred_element_type=jnp.float32)
                  + b_ref[...]).astype(o_ref.dtype)


def linear(x, w, b):
    """x: (M, K) @ w: (K, N) + b: (N,) -> (M, N). Tiled, larger axis outermost."""
    M, K = x.shape
    N = w.shape[1]
    tm, tn = _row_tile(M), _col_tile(N)
    grid, x_map, w_map, o_map = _mm_layout(M, N, tm, tn)
    return pl.pallas_call(
        _linear_kernel,
        out_shape=jax.ShapeDtypeStruct((M, N), jnp.float32),
        grid=grid,
        in_specs=[pl.BlockSpec((tm, K), x_map),
                  pl.BlockSpec((K, tn), w_map),
                  pl.BlockSpec((1, tn), w_map)],
        out_specs=pl.BlockSpec((tm, tn), o_map),
        compiler_params=pltpu.CompilerParams(
            dimension_semantics=("parallel", "parallel")),
    )(x, w, b.reshape(1, N))


def _matmul_nobias_kernel(x_ref, w_ref, o_ref):
    x = x_ref[...].astype(MXU_DTYPE)
    w = w_ref[...].astype(MXU_DTYPE)
    o_ref[...] = jnp.dot(x, w, preferred_element_type=jnp.float32).astype(o_ref.dtype)


def linear_nobias(x, w):
    """x: (M, K) @ w: (K, N) -> (M, N), no bias DMA. Tiled, larger axis outermost."""
    M, K = x.shape
    N = w.shape[1]
    tm, tn = _row_tile(M), _col_tile(N)
    grid, x_map, w_map, o_map = _mm_layout(M, N, tm, tn)
    return pl.pallas_call(
        _matmul_nobias_kernel,
        out_shape=jax.ShapeDtypeStruct((M, N), jnp.float32),
        grid=grid,
        in_specs=[pl.BlockSpec((tm, K), x_map),
                  pl.BlockSpec((K, tn), w_map)],
        out_specs=pl.BlockSpec((tm, tn), o_map),
        compiler_params=pltpu.CompilerParams(
            dimension_semantics=("parallel", "parallel")),
    )(x, w)


def _qkv_proj_kernel(x_ref, w_ref, b_ref, q_ref, k_ref, v_ref, *, h_qk):
    """Fused QKV projection; writes q/k/v as three separate lane-dense outputs."""
    x = x_ref[...].astype(MXU_DTYPE)
    w = w_ref[...].astype(MXU_DTYPE)
    y = jnp.dot(x, w, preferred_element_type=jnp.float32) + b_ref[...]
    q_ref[...] = y[:, :h_qk].astype(q_ref.dtype)
    k_ref[...] = y[:, h_qk:2 * h_qk].astype(k_ref.dtype)
    v_ref[...] = y[:, 2 * h_qk:].astype(v_ref.dtype)


def qkv_projection(x, w, b, h_qk, h_v):
    """x: (M, d_model) -> q (M, h_qk), k (M, h_qk), v (M, h_v)."""
    M, K = x.shape
    W = 2 * h_qk + h_v
    tm = _row_tile(M)
    kern = functools.partial(_qkv_proj_kernel, h_qk=h_qk)
    return pl.pallas_call(
        kern,
        out_shape=(jax.ShapeDtypeStruct((M, h_qk), jnp.float32),
                   jax.ShapeDtypeStruct((M, h_qk), jnp.float32),
                   jax.ShapeDtypeStruct((M, h_v), jnp.float32)),
        grid=(pl.cdiv(M, tm),),
        in_specs=[pl.BlockSpec((tm, K), lambda i: (i, 0)),
                  pl.BlockSpec((K, W), lambda i: (0, 0)),
                  pl.BlockSpec((1, W), lambda i: (0, 0))],
        out_specs=(pl.BlockSpec((tm, h_qk), lambda i: (i, 0)),
                   pl.BlockSpec((tm, h_qk), lambda i: (i, 0)),
                   pl.BlockSpec((tm, h_v), lambda i: (i, 0))),
        compiler_params=pltpu.CompilerParams(dimension_semantics=("parallel",)),
    )(x, w, b.reshape(1, W))


def _kv_proj_kernel(x_ref, w_ref, b_ref, k_ref, v_ref, *, h_qk):
    x = x_ref[...].astype(MXU_DTYPE)
    w = w_ref[...].astype(MXU_DTYPE)
    y = jnp.dot(x, w, preferred_element_type=jnp.float32) + b_ref[...]
    k_ref[...] = y[:, :h_qk].astype(k_ref.dtype)
    v_ref[...] = y[:, h_qk:].astype(v_ref.dtype)


def kv_projection(x, w, b, h_qk, h_v):
    M, K = x.shape
    W = h_qk + h_v
    tm = _row_tile(M)
    kern = functools.partial(_kv_proj_kernel, h_qk=h_qk)
    return pl.pallas_call(
        kern,
        out_shape=(jax.ShapeDtypeStruct((M, h_qk), jnp.float32),
                   jax.ShapeDtypeStruct((M, h_v), jnp.float32)),
        grid=(pl.cdiv(M, tm),),
        in_specs=[pl.BlockSpec((tm, K), lambda i: (i, 0)),
                  pl.BlockSpec((K, W), lambda i: (0, 0)),
                  pl.BlockSpec((1, W), lambda i: (0, 0))],
        out_specs=(pl.BlockSpec((tm, h_qk), lambda i: (i, 0)),
                   pl.BlockSpec((tm, h_v), lambda i: (i, 0))),
        compiler_params=pltpu.CompilerParams(dimension_semantics=("parallel",)),
    )(x, w, b.reshape(1, W))


def _linear_ln_pe_kernel(x_ref, w_ref, b_ref, g_ref, be_ref, pe_ref, o_ref):
    """LayerNorm(x @ w_in + b_in) + PE (encoder front-end), f32 statistics."""
    x = x_ref[0].astype(MXU_DTYPE)
    w = w_ref[...].astype(MXU_DTYPE)
    y = jnp.dot(x, w, preferred_element_type=jnp.float32) + b_ref[...]
    mu = jnp.mean(y, axis=-1, keepdims=True)
    var = jnp.mean(jnp.square(y - mu), axis=-1, keepdims=True)
    o_ref[0] = ((y - mu) * jax.lax.rsqrt(var + 1e-5) * g_ref[...]
                + be_ref[...] + pe_ref[...]).astype(o_ref.dtype)


def linear_layer_norm_pe(x, w, b, gamma, beta, pe):
    """x: (N, Ti, d_input) -> LN(x @ w + b) + pe[:Ti]  (N, Ti, d_model)."""
    N, Ti, D = x.shape
    d_model = w.shape[1]
    tq = _seq_tile(Ti)
    return pl.pallas_call(
        _linear_ln_pe_kernel,
        out_shape=jax.ShapeDtypeStruct((N, Ti, d_model), jnp.float32),
        grid=(N, pl.cdiv(Ti, tq)),
        in_specs=[pl.BlockSpec((1, tq, D), lambda b, i: (b, i, 0)),
                  pl.BlockSpec((D, d_model), lambda b, i: (0, 0)),
                  pl.BlockSpec((1, d_model), lambda b, i: (0, 0)),
                  pl.BlockSpec((1, d_model), lambda b, i: (0, 0)),
                  pl.BlockSpec((1, d_model), lambda b, i: (0, 0)),
                  pl.BlockSpec((tq, d_model), lambda b, i: (i, 0))],
        out_specs=pl.BlockSpec((1, tq, d_model), lambda b, i: (b, i, 0)),
        compiler_params=pltpu.CompilerParams(
            dimension_semantics=("parallel", "parallel")),
    )(x, w, b.reshape(1, d_model), gamma.reshape(1, d_model),
      beta.reshape(1, d_model), pe)


def _fc_res_ln_kernel(a_ref, w_ref, b_ref, r_ref, g_ref, be_ref, np_ref, o_ref):
    """(LayerNorm((a @ w_fc + b_fc) + residual)) * non_pad  (fused epilogue)."""
    a = a_ref[...].astype(MXU_DTYPE)
    w = w_ref[...].astype(MXU_DTYPE)
    y = jnp.dot(a, w, preferred_element_type=jnp.float32) + b_ref[...]
    z = y + r_ref[...]
    mu = jnp.mean(z, axis=-1, keepdims=True)
    var = jnp.mean(jnp.square(z - mu), axis=-1, keepdims=True)
    o_ref[...] = (((z - mu) * jax.lax.rsqrt(var + 1e-5) * g_ref[...] + be_ref[...])
                  * np_ref[...]).astype(o_ref.dtype)


def fc_residual_layer_norm(a, w, b, residual, gamma, beta, non_pad):
    """MHA output projection + residual + LayerNorm + non-pad mask. Tiled over M."""
    M, Ka = a.shape
    D = w.shape[1]
    tm = _row_tile(M)
    return pl.pallas_call(
        _fc_res_ln_kernel,
        out_shape=jax.ShapeDtypeStruct((M, D), jnp.float32),
        grid=(pl.cdiv(M, tm),),
        in_specs=[pl.BlockSpec((tm, Ka), lambda i: (i, 0)),
                  pl.BlockSpec((Ka, D), lambda i: (0, 0)),
                  pl.BlockSpec((1, D), lambda i: (0, 0)),
                  pl.BlockSpec((tm, D), lambda i: (i, 0)),
                  pl.BlockSpec((1, D), lambda i: (0, 0)),
                  pl.BlockSpec((1, D), lambda i: (0, 0)),
                  pl.BlockSpec((tm, 1), lambda i: (i, 0))],
        out_specs=pl.BlockSpec((tm, D), lambda i: (i, 0)),
        compiler_params=pltpu.CompilerParams(dimension_semantics=("parallel",)),
    )(a, w, b.reshape(1, D), residual, gamma.reshape(1, D), beta.reshape(1, D),
      non_pad)


def _mha_core_kernel(q_ref, k_ref, v_ref, km_ref, o_ref, *, n_head, d_k, d_v,
                     causal, tq):
    """All heads, one (batch, q-tile) grid step. Mask built in-kernel from the
    per-batch key-pad vector (+ causal iota); per-head output written straight
    into the lane-dense output block."""
    q = q_ref[0]                      # (tq, n_head*d_k) f32 (already 1/temp scaled)
    k = k_ref[0]                      # (Lk, n_head*d_k)
    v = v_ref[0]                      # (Lk, n_head*d_v)
    km = km_ref[0]                    # (1, Lk) f32, 1.0 == padded key
    lk = k.shape[0]

    masked = km > 0.0                 # (1, Lk) -> broadcasts over rows
    if causal:
        q0 = pl.program_id(1) * tq
        rows = q0 + jax.lax.broadcasted_iota(jnp.int32, (tq, lk), 0)
        cols = jax.lax.broadcasted_iota(jnp.int32, (tq, lk), 1)
        masked = jnp.logical_or(masked, cols > rows)

    neg = jnp.float32(-1e30)          # ~ -inf; avoids NaN on fully-masked rows
    for h in range(n_head):
        qh = q[:, h * d_k:(h + 1) * d_k].astype(MXU_DTYPE)
        kh = k[:, h * d_k:(h + 1) * d_k].astype(MXU_DTYPE)
        vh = v[:, h * d_v:(h + 1) * d_v].astype(MXU_DTYPE)
        s = jax.lax.dot_general(qh, kh, (((1,), (1,)), ((), ())),
                                preferred_element_type=jnp.float32)
        s = jnp.where(masked, neg, s)
        s_max = jnp.max(s, axis=-1, keepdims=True)
        p = jnp.exp(s - s_max)
        p = p * pl.reciprocal(jnp.sum(p, axis=-1, keepdims=True), approx=True)
        oh = jnp.dot(p.astype(MXU_DTYPE), vh, preferred_element_type=jnp.float32)
        o_ref[0, :, h * d_v:(h + 1) * d_v] = oh.astype(o_ref.dtype)


def mha_attention(q, k, v, key_mask, n_head, d_k, d_v, causal):
    """q: (B, Lq, H*dk), k: (B, Lk, H*dk), v: (B, Lk, H*dv),
    key_mask: (B, 1, Lk) float, 1.0 == padded key. Tiled over (B, Lq)."""
    B, Lq, H_qk = q.shape
    Lk = k.shape[1]
    H_v = v.shape[2]
    tq = _seq_tile(Lq)
    kern = functools.partial(_mha_core_kernel, n_head=n_head, d_k=d_k, d_v=d_v,
                             causal=causal, tq=tq)
    # TODO(synk): for very long Lk also tile Lk with an online-softmax accumulator.
    return pl.pallas_call(
        kern,
        out_shape=jax.ShapeDtypeStruct((B, Lq, H_v), jnp.float32),
        grid=(B, pl.cdiv(Lq, tq)),
        in_specs=[pl.BlockSpec((1, tq, H_qk), lambda b, i: (b, i, 0)),
                  pl.BlockSpec((1, Lk, H_qk), lambda b, i: (b, 0, 0)),
                  pl.BlockSpec((1, Lk, H_v), lambda b, i: (b, 0, 0)),
                  pl.BlockSpec((1, 1, Lk), lambda b, i: (b, 0, 0))],
        out_specs=pl.BlockSpec((1, tq, H_v), lambda b, i: (b, i, 0)),
        compiler_params=pltpu.CompilerParams(
            dimension_semantics=("parallel", "parallel")),
    )(q, k, v, key_mask)


def _ffn_kernel(x_ref, w1_ref, b1_ref, w2_ref, b2_ref, g_ref, be_ref, np_ref, o_ref):
    x = x_ref[...]
    h = jnp.maximum(
        jnp.dot(x.astype(MXU_DTYPE), w1_ref[...].astype(MXU_DTYPE),
                preferred_element_type=jnp.float32) + b1_ref[...], 0.0)
    y = jnp.dot(h.astype(MXU_DTYPE), w2_ref[...].astype(MXU_DTYPE),
                preferred_element_type=jnp.float32) + b2_ref[...]
    z = y + x                               # residual (x already non-pad masked)
    mu = jnp.mean(z, axis=-1, keepdims=True)
    var = jnp.mean(jnp.square(z - mu), axis=-1, keepdims=True)
    o_ref[...] = (((z - mu) * jax.lax.rsqrt(var + 1e-5) * g_ref[...] + be_ref[...])
                  * np_ref[...]).astype(o_ref.dtype)


def position_wise_ffn(p, x, non_pad_flat):
    """Fused FFN + residual + LayerNorm + non-pad mask. x: (B, L, d_model)."""
    B, L, d_model = x.shape
    M = B * L
    d_ff = p['w1'].shape[1]
    tm = _row_tile(M, _FFN_TM)
    x2 = x.reshape(M, d_model)
    out = pl.pallas_call(
        _ffn_kernel,
        out_shape=jax.ShapeDtypeStruct((M, d_model), jnp.float32),
        grid=(pl.cdiv(M, tm),),
        in_specs=[pl.BlockSpec((tm, d_model), lambda i: (i, 0)),
                  pl.BlockSpec((d_model, d_ff), lambda i: (0, 0)),
                  pl.BlockSpec((1, d_ff), lambda i: (0, 0)),
                  pl.BlockSpec((d_ff, d_model), lambda i: (0, 0)),
                  pl.BlockSpec((1, d_model), lambda i: (0, 0)),
                  pl.BlockSpec((1, d_model), lambda i: (0, 0)),
                  pl.BlockSpec((1, d_model), lambda i: (0, 0)),
                  pl.BlockSpec((tm, 1), lambda i: (i, 0))],
        out_specs=pl.BlockSpec((tm, d_model), lambda i: (i, 0)),
        compiler_params=pltpu.CompilerParams(
            dimension_semantics=("parallel",),
            vmem_limit_bytes=_VMEM_LIMIT),
    )(x2, p['w1'], p['b1'].reshape(1, -1), p['w2'], p['b2'].reshape(1, -1),
      p['ln_g'].reshape(1, -1), p['ln_b'].reshape(1, -1), non_pad_flat)
    return out.reshape(B, L, d_model)


# ----------------------------------------------------------------------------
# Model (glue in plain JAX, hot paths above in Pallas)
# ----------------------------------------------------------------------------

def mha_self(p, x, key_mask, non_pad_flat, causal):
    """Self-attention sublayer (fused QKV + attention + fc/res/LN/non-pad)."""
    B, L, d_model = x.shape
    n_head, d_k, d_v = p['n_head'], p['d_k'], p['d_v']
    H_qk, H_v = n_head * d_k, n_head * d_v
    x_flat = x.reshape(B * L, d_model)
    q, k, v = qkv_projection(x_flat, p['w_qkv'], p['b_qkv'], H_qk, H_v)
    attn = mha_attention(q.reshape(B, L, H_qk), k.reshape(B, L, H_qk),
                         v.reshape(B, L, H_v), key_mask, n_head, d_k, d_v, causal)
    out = fc_residual_layer_norm(attn.reshape(B * L, H_v), p['w_fc'], p['b_fc'],
                                 x_flat, p['ln_g'], p['ln_b'], non_pad_flat)
    return out.reshape(B, L, d_model)


def mha_cross(p, x, mem, key_mask, non_pad_flat):
    """Decoder-encoder attention sublayer."""
    B, Lq, d_model = x.shape
    Lk = mem.shape[1]
    n_head, d_k, d_v = p['n_head'], p['d_k'], p['d_v']
    H_qk, H_v = n_head * d_k, n_head * d_v
    x_flat = x.reshape(B * Lq, d_model)
    q = linear(x_flat, p['w_qs'], p['b_qs'])
    k, v = kv_projection(mem.reshape(B * Lk, d_model), p['w_kv'], p['b_kv'],
                         H_qk, H_v)
    attn = mha_attention(q.reshape(B, Lq, H_qk), k.reshape(B, Lk, H_qk),
                         v.reshape(B, Lk, H_v), key_mask, n_head, d_k, d_v,
                         causal=False)
    out = fc_residual_layer_norm(attn.reshape(B * Lq, H_v), p['w_fc'], p['b_fc'],
                                 x_flat, p['ln_g'], p['ln_b'], non_pad_flat)
    return out.reshape(B, Lq, d_model)


def encoder_forward(params, padded_input, input_lengths):
    N, Ti, D = padded_input.shape

    t = jnp.arange(Ti)[None, :]
    non_pad = (t < input_lengths[:, None]).astype(jnp.float32)     # (N, Ti)
    non_pad_flat = non_pad.reshape(N * Ti, 1)
    key_mask = (1.0 - non_pad).reshape(N, 1, Ti)                   # 1.0 == padded key

    x = linear_layer_norm_pe(padded_input, params['w_in'], params['b_in'],
                             params['ln_in_g'], params['ln_in_b'],
                             params['pe'][:Ti])

    for layer in params['layers']:
        x = mha_self(layer['slf'], x, key_mask, non_pad_flat, causal=False)
        x = position_wise_ffn(layer['ffn'], x, non_pad_flat)
    return x


def decoder_forward(params, ys_in_pad, enc_output, input_lengths):
    N, L = ys_in_pad.shape
    Ti = enc_output.shape[1]
    d_model = params['d_model']
    eos_id = params['eos_id']

    non_pad = (ys_in_pad != eos_id).astype(jnp.float32)            # (N, L)
    non_pad_flat = non_pad.reshape(N * L, 1)
    slf_key_mask = (ys_in_pad == eos_id).astype(jnp.float32).reshape(N, 1, L)
    t = jnp.arange(Ti)[None, :]
    enc_key_mask = (t >= input_lengths[:, None]).astype(jnp.float32).reshape(N, 1, Ti)

    emb = jnp.take(params['emb'], ys_in_pad, axis=0)               # (N, L, d_model)
    x = emb * params['x_logit_scale'] + params['pe'][None, :L, :]

    for layer in params['layers']:
        x = mha_self(layer['slf'], x, slf_key_mask, non_pad_flat, causal=True)
        x = mha_cross(layer['enc'], x, enc_output, enc_key_mask, non_pad_flat)
        x = position_wise_ffn(layer['ffn'], x, non_pad_flat)

    n_vocab = params['emb'].shape[0]
    logits = linear_nobias(x.reshape(N * L, d_model), params['emb_prj'])
    return logits.reshape(N, L, n_vocab)


def transformer_forward(enc_params, dec_params, padded_input, input_lengths, ys_in_pad):
    enc_out = encoder_forward(enc_params, padded_input, input_lengths)
    pred = decoder_forward(dec_params, ys_in_pad, enc_out, input_lengths)
    return pred


# ----------------------------------------------------------------------------
# Deterministic parameter init & preprocessing glue
# ----------------------------------------------------------------------------

def _nrm(key, shape, std):
    return jax.random.normal(key, shape, jnp.float32) * std


def init_mha(key, n_head, d_model, d_k, d_v):
    ks = jax.random.split(key, 4)
    inv_temp = 1.0 / math.sqrt(d_k)       # fold 1/temperature into q projection
    w_qs = _nrm(ks[0], (d_model, n_head * d_k), math.sqrt(2.0 / (d_model + d_k)))
    b_qs = jnp.zeros((n_head * d_k,), jnp.float32)
    w_ks = _nrm(ks[1], (d_model, n_head * d_k), math.sqrt(2.0 / (d_model + d_k)))
    b_ks = jnp.zeros((n_head * d_k,), jnp.float32)
    w_vs = _nrm(ks[2], (d_model, n_head * d_v), math.sqrt(2.0 / (d_model + d_v)))
    b_vs = jnp.zeros((n_head * d_v,), jnp.float32)
    w_qs_s, b_qs_s = w_qs * inv_temp, b_qs * inv_temp
    return dict(
        n_head=n_head, d_k=d_k, d_v=d_v,
        # cross-attention q projection (already temperature-scaled)
        w_qs=w_qs_s.astype(WEIGHT_DTYPE), b_qs=b_qs_s,
        # self-attention fused QKV (q columns temperature-scaled)
        w_qkv=jnp.concatenate([w_qs_s, w_ks, w_vs], axis=1).astype(WEIGHT_DTYPE),
        b_qkv=jnp.concatenate([b_qs_s, b_ks, b_vs], axis=0),
        # cross-attention fused KV projection of encoder memory
        w_kv=jnp.concatenate([w_ks, w_vs], axis=1).astype(WEIGHT_DTYPE),
        b_kv=jnp.concatenate([b_ks, b_vs], axis=0),
        w_fc=_nrm(ks[3], (n_head * d_v, d_model),
                  math.sqrt(2.0 / (n_head * d_v + d_model))).astype(WEIGHT_DTYPE),
        b_fc=jnp.zeros((d_model,), jnp.float32),
        ln_g=jnp.ones((d_model,), jnp.float32),
        ln_b=jnp.zeros((d_model,), jnp.float32),
    )


def init_ffn(key, d_model, d_inner):
    k1, k2 = jax.random.split(key, 2)
    return dict(
        w1=_nrm(k1, (d_model, d_inner),
                math.sqrt(2.0 / (d_model + d_inner))).astype(WEIGHT_DTYPE),
        b1=jnp.zeros((d_inner,), jnp.float32),
        w2=_nrm(k2, (d_inner, d_model),
                math.sqrt(2.0 / (d_model + d_inner))).astype(WEIGHT_DTYPE),
        b2=jnp.zeros((d_model,), jnp.float32),
        ln_g=jnp.ones((d_model,), jnp.float32),
        ln_b=jnp.zeros((d_model,), jnp.float32),
    )


def positional_encoding_table(d_model, max_len):
    position = np.arange(max_len, dtype=np.float32)[:, None]
    div_term = np.exp(np.arange(0, d_model, 2, dtype=np.float32)
                      * -(math.log(10000.0) / d_model))
    pe = np.zeros((max_len, d_model), np.float32)
    pe[:, 0::2] = np.sin(position * div_term)
    pe[:, 1::2] = np.cos(position * div_term)
    return jnp.asarray(pe)


def init_encoder(key, d_input, n_layers, n_head, d_k, d_v, d_model, d_inner, pe_maxlen):
    keys = jax.random.split(key, n_layers * 2 + 1)
    layers = []
    for i in range(n_layers):
        layers.append(dict(slf=init_mha(keys[2 * i], n_head, d_model, d_k, d_v),
                           ffn=init_ffn(keys[2 * i + 1], d_model, d_inner)))
    return dict(
        d_model=d_model,
        w_in=_nrm(keys[-1], (d_input, d_model),
                  math.sqrt(2.0 / (d_input + d_model))).astype(WEIGHT_DTYPE),
        b_in=jnp.zeros((d_model,), jnp.float32),
        ln_in_g=jnp.ones((d_model,), jnp.float32),
        ln_in_b=jnp.zeros((d_model,), jnp.float32),
        pe=positional_encoding_table(d_model, pe_maxlen),
        layers=layers,
    )


def init_decoder(key, n_tgt_vocab, n_layers, n_head, d_k, d_v, d_model, d_inner,
                 pe_maxlen, eos_id):
    keys = jax.random.split(key, n_layers * 3 + 1)
    layers = []
    for i in range(n_layers):
        layers.append(dict(slf=init_mha(keys[3 * i], n_head, d_model, d_k, d_v),
                           enc=init_mha(keys[3 * i + 1], n_head, d_model, d_k, d_v),
                           ffn=init_ffn(keys[3 * i + 2], d_model, d_inner)))
    emb = _nrm(keys[-1], (n_tgt_vocab, d_model), math.sqrt(2.0 / (n_tgt_vocab + d_model)))
    return dict(
        d_model=d_model,
        eos_id=eos_id,
        x_logit_scale=float(d_model) ** 0.5,   # tgt_emb_prj_weight_sharing=True
        emb=emb,                               # f32 for the embedding gather
        emb_prj=jnp.transpose(emb).astype(WEIGHT_DTYPE),  # pre-transposed, bf16
        pe=positional_encoding_table(d_model, pe_maxlen),
        layers=layers,
    )


def decoder_preprocess(padded_target_np, sos_id, eos_id):
    """Add <sos>/<eos>, pad (numpy host-side glue, matches Decoder.preprocess)."""
    ys = [row[row != IGNORE_ID] for row in padded_target_np]
    max_len = max(len(y) for y in ys) + 1
    N = len(ys)
    ys_in = np.full((N, max_len), eos_id, dtype=np.int32)
    ys_out = np.full((N, max_len), IGNORE_ID, dtype=np.int32)
    for i, y in enumerate(ys):
        ys_in[i, 0] = sos_id
        ys_in[i, 1:1 + len(y)] = y
        ys_out[i, :len(y)] = y
        ys_out[i, len(y)] = eos_id
    return ys_in, ys_out


# ----------------------------------------------------------------------------
# Main
# ----------------------------------------------------------------------------

if __name__ == "__main__":
    # Small config consistent with the module's __init__ signatures.
    N, Ti, D_INPUT = 2, 12, 10
    D_MODEL, D_INNER = 32, 64
    N_HEAD, D_K, D_V = 4, 8, 8
    N_LAYERS_ENC, N_LAYERS_DEC = 2, 2
    N_TGT_VOCAB = 20
    SOS_ID, EOS_ID = N_TGT_VOCAB - 2, N_TGT_VOCAB - 1
    PE_MAXLEN = 100
    TO = 6

    key = jax.random.PRNGKey(0)
    k_in, k_tgt, k_enc, k_dec = jax.random.split(key, 4)

    padded_input = jax.random.normal(k_in, (N, Ti, D_INPUT), jnp.float32)
    input_lengths = jnp.array([Ti, 9], dtype=jnp.int32)

    padded_target_np = np.array(
        jax.random.randint(k_tgt, (N, TO), 0, N_TGT_VOCAB - 2, dtype=jnp.int32))
    padded_target_np[1, -2:] = IGNORE_ID   # ragged target lengths

    ys_in_pad_np, ys_out_pad_np = decoder_preprocess(padded_target_np, SOS_ID, EOS_ID)
    ys_in_pad = jnp.asarray(ys_in_pad_np)
    gold = jnp.asarray(ys_out_pad_np)

    enc_params = init_encoder(k_enc, D_INPUT, N_LAYERS_ENC, N_HEAD, D_K, D_V,
                              D_MODEL, D_INNER, PE_MAXLEN)
    dec_params = init_decoder(k_dec, N_TGT_VOCAB, N_LAYERS_DEC, N_HEAD, D_K, D_V,
                              D_MODEL, D_INNER, PE_MAXLEN, EOS_ID)

    pred = transformer_forward(enc_params, dec_params, padded_input,
                               input_lengths, ys_in_pad)
    pred = jax.block_until_ready(pred)
    gold = jax.block_until_ready(gold)

    assert pred.shape == (N, ys_in_pad.shape[1], N_TGT_VOCAB)
    assert bool(jnp.all(jnp.isfinite(pred)))
    print("KERNEL_OK")
</pallas_src>

<mosaic_0001>
module attributes {stable_mosaic.version = 11 : i64} {
  func.func @_linear_ln_pe_kernel(%arg0: i32, %arg1: i32, %arg2: memref<1x12x10xf32, #tpu.memory_space<vmem>>, %arg3: memref<10x32xbf16, #tpu.memory_space<vmem>>, %arg4: memref<1x32xf32, #tpu.memory_space<vmem>>, %arg5: memref<1x32xf32, #tpu.memory_space<vmem>>, %arg6: memref<1x32xf32, #tpu.memory_space<vmem>>, %arg7: memref<12x32xf32, #tpu.memory_space<vmem>>, %arg8: memref<1x12x32xf32, #tpu.memory_space<vmem>>) attributes {dimension_semantics = [#tpu.dimension_semantics<parallel>, #tpu.dimension_semantics<parallel>], iteration_bounds = array<i64: 2, 1>, scalar_prefetch = 0 : i64, scratch_operands = 0 : i64, tpu.core_type = #tpu.core_type<tc>, window_params = [{transform_indices = @transform_0, window_bounds = array<i64: 1, 12, 10>}, {pipeline_mode = #tpu.pipeline_mode<synchronous>, transform_indices = @transform_1, window_bounds = array<i64: 10, 32>}, {pipeline_mode = #tpu.pipeline_mode<synchronous>, transform_indices = @transform_2, window_bounds = array<i64: 1, 32>}, {pipeline_mode = #tpu.pipeline_mode<synchronous>, transform_indices = @transform_3, window_bounds = array<i64: 1, 32>}, {pipeline_mode = #tpu.pipeline_mode<synchronous>, transform_indices = @transform_4, window_bounds = array<i64: 1, 32>}, {transform_indices = @transform_5, window_bounds = array<i64: 12, 32>}, {transform_indices = @transform_6, window_bounds = array<i64: 1, 12, 32>}]} {
    %c0 = arith.constant 0 : index
    %c0_0 = arith.constant 0 : index
    %c0_1 = arith.constant 0 : index
    %0 = vector.load %arg2[%c0, %c0_0, %c0_1] : memref<1x12x10xf32, #tpu.memory_space<vmem>>, vector<1x12x10xf32>
    %1 = vector.shape_cast %0 : vector<1x12x10xf32> to vector<12x10xf32>
    %2 = arith.truncf %1 : vector<12x10xf32> to vector<12x10xbf16>
    %c0_2 = arith.constant 0 : index
    %c0_3 = arith.constant 0 : index
    %3 = vector.load %arg3[%c0_2, %c0_3] : memref<10x32xbf16, #tpu.memory_space<vmem>>, vector<10x32xbf16>
    %cst = arith.constant dense<0.000000e+00> : vector<12x32xf32>
    %4 = tpu.matmul %2, %3, %cst {dimension_numbers = #tpu.dot_dimension_numbers<[1], [0], [0], [1], [0, 0, 1, 1], [], []>} : vector<12x10xbf16>, vector<10x32xbf16>, vector<12x32xf32> -> vector<12x32xf32>
    %c0_4 = arith.constant 0 : index
    %c0_5 = arith.constant 0 : index
    %5 = vector.load %arg4[%c0_4, %c0_5] : memref<1x32xf32, #tpu.memory_space<vmem>>, vector<1x32xf32>
    %6 = vector.broadcast %5 : vector<1x32xf32> to vector<12x32xf32>
    %7 = arith.addf %4, %6 : vector<12x32xf32>
    %cst_6 = arith.constant dense<0.000000e+00> : vector<12xf32>
    %8 = vector.multi_reduction <add>, %7, %cst_6 [1] : vector<12x32xf32> to vector<12xf32>
    %9 = vector.shape_cast %8 : vector<12xf32> to vector<12x1xf32>
    %cst_7 = arith.constant 3.200000e+01 : f32
    %10 = vector.broadcast %cst_7 : f32 to vector<12x1xf32>
    %11 = arith.divf %9, %10 : vector<12x1xf32>
    %12 = vector.broadcast %11 : vector<12x1xf32> to vector<12x32xf32>
    %13 = arith.subf %7, %12 : vector<12x32xf32>
    %14 = arith.mulf %13, %13 : vector<12x32xf32>
    %cst_8 = arith.constant dense<0.000000e+00> : vector<12xf32>
    %15 = vector.multi_reduction <add>, %14, %cst_8 [1] : vector<12x32xf32> to vector<12xf32>
    %16 = vector.shape_cast %15 : vector<12xf32> to vector<12x1xf32>
    %cst_9 = arith.constant 3.200000e+01 : f32
    %17 = vector.broadcast %cst_9 : f32 to vector<12x1xf32>
    %18 = arith.divf %16, %17 : vector<12x1xf32>
    %19 = vector.broadcast %11 : vector<12x1xf32> to vector<12x32xf32>
    %20 = arith.subf %7, %19 : vector<12x32xf32>
    %cst_10 = arith.constant 9.99999974E-6 : f32
    %21 = vector.broadcast %cst_10 : f32 to vector<12x1xf32>
    %22 = arith.addf %18, %21 : vector<12x1xf32>
    %23 = math.rsqrt %22 : vector<12x1xf32>
    %24 = vector.broadcast %23 : vector<12x1xf32> to vector<12x32xf32>
    %25 = arith.mulf %20, %24 : vector<12x32xf32>
    %c0_11 = arith.constant 0 : index
    %c0_12 = arith.constant 0 : index
    %26 = vector.load %arg5[%c0_11, %c0_12] : memref<1x32xf32, #tpu.memory_space<vmem>>, vector<1x32xf32>
    %27 = vector.broadcast %26 : vector<1x32xf32> to vector<12x32xf32>
    %28 = arith.mulf %25, %27 : vector<12x32xf32>
    %c0_13 = arith.constant 0 : index
    %c0_14 = arith.constant 0 : index
    %29 = vector.load %arg6[%c0_13, %c0_14] : memref<1x32xf32, #tpu.memory_space<vmem>>, vector<1x32xf32>
    %30 = vector.broadcast %29 : vector<1x32xf32> to vector<12x32xf32>
    %31 = arith.addf %28, %30 : vector<12x32xf32>
    %c0_15 = arith.constant 0 : index
    %c0_16 = arith.constant 0 : index
    %32 = vector.load %arg7[%c0_15, %c0_16] : memref<12x32xf32, #tpu.memory_space<vmem>>, vector<12x32xf32>
    %33 = arith.addf %31, %32 : vector<12x32xf32>
    %c0_17 = arith.constant 0 : index
    %c0_18 = arith.constant 0 : index
    %c0_19 = arith.constant 0 : index
    %34 = vector.load %arg8[%c0_17, %c0_18, %c0_19] : memref<1x12x32xf32, #tpu.memory_space<vmem>>, vector<1x12x32xf32>
    %35 = vector.shape_cast %34 : vector<1x12x32xf32> to vector<12x32xf32>
    %36 = vector.shape_cast %33 : vector<12x32xf32> to vector<1x12x32xf32>
    tpu.vector_store %arg8[%c0_17, %c0_18, %c0_19], %36 {strides = array<i32>} : memref<1x12x32xf32, #tpu.memory_space<vmem>>, vector<1x12x32xf32>,
    return
  }
  func.func @transform_0(%arg0: i32, %arg1: i32) -> (i32, i32, i32) {
    %c0_i32 = arith.constant 0 : i32
    %c0_i32_0 = arith.constant 0 : i32
    return %arg0, %arg1, %c0_i32 : i32, i32, i32
  }
  func.func @transform_1(%arg0: i32, %arg1: i32) -> (i32, i32) {
    %c0_i32 = arith.constant 0 : i32
    %c0_i32_0 = arith.constant 0 : i32
    %c0_i32_1 = arith.constant 0 : i32
    return %c0_i32, %c0_i32_0 : i32, i32
  }
  func.func @transform_2(%arg0: i32, %arg1: i32) -> (i32, i32) {
    %c0_i32 = arith.constant 0 : i32
    %c0_i32_0 = arith.constant 0 : i32
    %c0_i32_1 = arith.constant 0 : i32
    return %c0_i32, %c0_i32_0 : i32, i32
  }
  func.func @transform_3(%arg0: i32, %arg1: i32) -> (i32, i32) {
    %c0_i32 = arith.constant 0 : i32
    %c0_i32_0 = arith.constant 0 : i32
    %c0_i32_1 = arith.constant 0 : i32
    return %c0_i32, %c0_i32_0 : i32, i32
  }
  func.func @transform_4(%arg0: i32, %arg1: i32) -> (i32, i32) {
    %c0_i32 = arith.constant 0 : i32
    %c0_i32_0 = arith.constant 0 : i32
    %c0_i32_1 = arith.constant 0 : i32
    return %c0_i32, %c0_i32_0 : i32, i32
  }
  func.func @transform_5(%arg0: i32, %arg1: i32) -> (i32, i32) {
    %c0_i32 = arith.constant 0 : i32
    %c0_i32_0 = arith.constant 0 : i32
    return %arg1, %c0_i32 : i32, i32
  }
  func.func @transform_6(%arg0: i32, %arg1: i32) -> (i32, i32, i32) {
    %c0_i32 = arith.constant 0 : i32
    %c0_i32_0 = arith.constant 0 : i32
    return %arg0, %arg1, %c0_i32 : i32, i32, i32
  }
}

</mosaic_0001>

<bundles_post_ra>
// kernel: tpu_custom_call.1
= control target key start
LH: loop header
LB: loop body
LE: loop exit
PB: predicated region body
PF: predicated region fallthrough
CT: control target
= control target key end

     0   :  { %s654_s21 = smov 0   ;;  %s656_s22 = smov 0   ;;  %s718_s0 = inlined_call_operand.vmem [shape: f32[2,12,10], index: 0, kind: input, shape index: {}]   ;;  %s719_s1 = inlined_call_operand.vmem [shape: bf16[10,32], index: 1, kind: input, shape index: {}]   ;;  %s720_s2 = inlined_call_operand.vmem [shape: f32[1,32], index: 2, kind: input, shape index: {}]   ;;  %s721_s3 = inlined_call_operand.vmem [shape: f32[1,32], index: 3, kind: input, shape index: {}]   ;;  %s722_s4 = inlined_call_operand.vmem [shape: f32[1,32], index: 4, kind: input, shape index: {}]   ;;  %s723_s5 = inlined_call_operand.vmem [shape: f32[12,32], index: 5, kind: input, shape index: {}]   ;;  %s724_s6 = inlined_call_operand.vmem [shape: f32[2,12,32], index: 6, kind: output, shape index: {}]  }
   0x1   :  { %s658_s23 = smov 0  }
   0x2 LB: > { %s28_s24 = sadd.s32 1, %s611_s22  ;;  %p540_p0 = scmp.ge.s32.totalorder %s615_s23, 1  ;;  %s615_s23 = sphi %s658_s23, %s16_s23   ;;  %s611_s22 = sphi %s656_s22, %s726_s22   ;;  %s607_s21 = sphi %s654_s21, %s725_s21  }
   0x3   : > { %p30_p1 = scmp.ge.s32.totalorder %s28_s24, 2  ;;  %p244_p2 = scmp.lt.s32.totalorder %s615_s23, 3 }
   0x5   : > { %s728_s24 = smov (%p30_p1, %s28_s24), 0  ;;  %p245_p3 = pnand %p540_p0, %p244_p2 }
   0x6   : > { %p288_p4 = scmp.lt.s32.totalorder (!%p245_p3), %s607_s21, 1 }
   0x7   : > { %248 = sbr.rel (%p245_p3) target bundleno = 528 (0x210), region = 44 }
   0xc   : > { %vm335_vm0 = vcmask 1044480   ;;  %v617_v0 = vmov 0.0   ;;  %v588_v1 = vld [vmem:[%s719_s1] sm:$0x1f]   ;;  %vm618_vm1 = vmmov 0   ;;  %s730_s21 = smov (!%p288_p4, %s607_s21), 1 }
   0xd   : > { %556 = vmatprep.subr.bf16.mxu0 %v617_v0  ;;  %558 = vmatprep.mubr.msk.bf16.mxu0 %vm618_vm1, %v617_v0  ;;  %v337_v2 = vsel %vm335_vm0, %v588_v1, 0  ;;  %s552_s27 = sshll.u32 %s730_s21, 4  ;;  %vm331_vm2 = vcmask 80896   ;;  %v545_v6 = vld [vmem:[%s720_s2] ss:$0 sm:$0xff]  ;;  %vm380_vm3 = vcmask 261120  }
   0xe   : > { %557 = vmatpush3.bf16.msra.mxu0 %v337_v2  ;;  %s295_s30 = scalar_lea.vmem %s718_s0, %s552_s27  ;;  %vm384_vm4 = vcmask 257024   ;;  %v548_v32 = vld [vmem:[%s721_s3] ss:$0 sm:$0xff]  ;;  %s311_s17 = scalar_lea.vmem %s724_s6, %s552_s27  ;;  %v428_v42 = vld [vmem:[%s723_s5 + $0x8] sm:$0xf] }
   0xf   : > { %v314_v3 = vld [vmem:[%s295_s30] sm:$0xff]  ;;  %v315_v4 = vld [vmem:[%s295_s30 + $0x8] sm:$0xf] }
  0x10   : > { %v316_v5 = vpack.c.bf16 %v315_v4, %v314_v3  ;;  %v549_v34 = vld [vmem:[%s722_s4] ss:$0 sm:$0xff] }
  0x11   : > { %v427_v37 = vld [vmem:[%s723_s5] sm:$0xff] }
  0x12   : > { %559 = vmatmul.mubr.msk.bf16.vlgmr.msra.gmra.mxu0 %vm331_vm2, %v316_v5 }
  0xd2   : > { %v373_v7 = vpop.f32.mrf.mxu0 }
  0xd3   : > { %v374_v8 = vadd.f32 %v545_v6, %v373_v7 }
  0xd4   : > { %v560_v9 = vpop.f32.mrf.mxu0 }
  0xd5   : > { %v381_v10 = vsel %vm380_vm3, %v374_v8, 0.0 }
  0xd6   : > { %382 = vadd.xlane.f32.xlu0 %v381_v10  ;;  %v376_v11 = vpop.f32.mrf.mxu0 }
  0xd7   : > { %v377_v12 = vadd.f32 %v545_v6, %v376_v11 }
  0xd8   : > { %v561_v13 = vpop.f32.mrf.mxu0 }
  0xd9   : > { %v385_v14 = vsel %vm384_vm4, %v377_v12, 0.0 }
  0xda   : > { %386 = vadd.xlane.f32.xlu0 %v385_v14 }
 0x15f   : > { %v383_v15 = vpop.xlane.xlu0 %382 }
 0x160   : > { %v389_v16 = vmul.f32 0.03125, %v383_v15 }
 0x162   : > { %v391_v17 = vsub.f32 %v374_v8, %v389_v16 }
 0x163   : > { %v387_v18 = vpop.xlane.xlu0 %386 }
 0x164   : > { %v390_v19 = vmul.f32 0.03125, %v387_v18  ;;  %v393_v20 = vmul.f32 %v391_v17, %v391_v17 }
 0x166   : > { %v392_v21 = vsub.f32 %v377_v12, %v390_v19  ;;  %v395_v22 = vsel %vm380_vm3, %v393_v20, 0.0 }
 0x167   : > { %396 = vadd.xlane.f32.xlu1 %v395_v22 }
 0x168   : > { %v394_v23 = vmul.f32 %v392_v21, %v392_v21 }
 0x16a   : > { %v398_v24 = vsel %vm384_vm4, %v394_v23, 0.0 }
 0x16b   : > { %399 = vadd.xlane.f32.xlu1 %v398_v24 }
 0x1f0   : > { %v397_v25 = vpop.xlane.xlu1 %396 }
 0x1f1   : > { %v401_v26 = vmul.f32 0.03125, %v397_v25 }
 0x1f3   : > { %v403_v27 = vadd.f32 1e-05, %v401_v26 }
 0x1f4   : > { %v400_v28 = vpop.xlane.xlu1 %399 }
 0x1f5   : > { %589 = vrsqrt.f32 %v403_v27  ;;  %v402_v29 = vmul.f32 0.03125, %v400_v28 }
 0x1f7   : > { %v404_v30 = vadd.f32 1e-05, %v402_v29 }
 0x1f9   : > { %591 = vrsqrt.f32 %v404_v30 }
 0x202   : > { %v590_v31 = vpop.eup %589 }
 0x203   : > { %v407_v33 = vmul.f32 %v590_v31, %v391_v17 }
 0x205   : > { %v416_v35 = vmul.f32 %v548_v32, %v407_v33 }
 0x206   : > { %v592_v36 = vpop.eup %591 }
 0x207   : > { %v425_v38 = vadd.f32 %v549_v34, %v416_v35  ;;  %v408_v39 = vmul.f32 %v592_v36, %v392_v21 }
 0x209   : > { %v429_v40 = vadd.f32 %v427_v37, %v425_v38  ;;  %v417_v41 = vmul.f32 %v548_v32, %v408_v39 }
 0x20b   : > { %431 = vst.msk [vmem:[%s311_s17] sm:$0xff] %vm380_vm3, %v429_v40  ;;  %v426_v43 = vadd.f32 %v549_v34, %v417_v41 }
 0x20d   : > { %v430_v44 = vadd.f32 %v428_v42, %v426_v43 }
 0x20f   : > { %432 = vst.msk [vmem:[%s311_s17 + $0x8] sm:$0xf] %vm384_vm4, %v430_v44 }
 0x210 PF: > { %s16_s23 = sadd.s32 1, %s615_s23   ;;  %s725_s21 = smov %s611_s22 }
 0x211   : > { %p13_p5 = scmp.ge.s32.totalorder %s16_s23, 4   ;;  %s726_s22 = smov %s728_s24 }
 0x213   :  { %15 = sbr.rel (!%p13_p5) target bundleno = 2 (0x2), region = 77 }

</bundles_post_ra>
